<compile_context>
chip_gen: v5e
topology: v5e:2x2
jax: 0.10.0
libtpu: 0.0.40
codegen_flags: <defaults>
</compile_context>

<pallas_src>
import functools
import math

import jax
import jax.numpy as jnp
from jax.experimental import pallas as pl
from jax.experimental.pallas import tpu as pltpu


# ---------------------------------------------------------------------------
# Kernel (one batch element per grid step)
# ---------------------------------------------------------------------------
def mha_kernel(enc_ref, state_ref, mask_ref,
               w1_ref, b1_ref,
               wqkv_ref, bqkv_ref,
               wout_ref, bout_ref,
               w2_ref, b2_ref,
               w3e_ref, w3h_ref, b3_ref,
               w4_ref, b4_ref,
               scores_ref, xx_ref,
               *, num_heads, head_dim):
    f32 = jnp.float32
    enc = enc_ref[...]        # [J, enc]
    state = state_ref[...]    # [J, ctx]
    mask = mask_ref[...]      # [J, 1]

    # linear1: [J, ctx] @ [ctx, E]
    x1 = jnp.dot(state, w1_ref[...], preferred_element_type=f32) + b1_ref[...]

    # --- nn.MultiheadAttention(q=k=v=x1), eval mode ---
    # Per-head projection weights are pre-split on the leading axis:
    #   wqkv_ref[h]              -> q weights of head h   (scale pre-folded)
    #   wqkv_ref[H + h]          -> k weights of head h
    #   wqkv_ref[2H + h]         -> v weights of head h
    acc = None
    for h in range(num_heads):
        qh = jnp.dot(x1, wqkv_ref[h], preferred_element_type=f32) + bqkv_ref[h]
        kh = (jnp.dot(x1, wqkv_ref[num_heads + h], preferred_element_type=f32)
              + bqkv_ref[num_heads + h])
        vh = (jnp.dot(x1, wqkv_ref[2 * num_heads + h], preferred_element_type=f32)
              + bqkv_ref[2 * num_heads + h])

        # scores: q @ k^T without materializing a transpose
        s = jax.lax.dot_general(qh, kh, (((1,), (1,)), ((), ())),
                                preferred_element_type=f32)          # [J, J]
        s = s - jnp.max(s, axis=-1, keepdims=True)
        p = jnp.exp(s)
        p = p * pl.reciprocal(jnp.sum(p, axis=-1, keepdims=True), approx=True)
        oh = jnp.dot(p, vh, preferred_element_type=f32)              # [J, hd]

        # out_proj contribution of this head: oh @ wout_h  (wout pre-split [H, hd, E])
        contrib = jnp.dot(oh, wout_ref[h], preferred_element_type=f32)
        acc = contrib if acc is None else acc + contrib

    x2 = x1 + acc + bout_ref[...]                                    # residual add
    # relu(linear2)
    x2 = jnp.maximum(jnp.dot(x2, w2_ref[...], preferred_element_type=f32)
                     + b2_ref[...], 0.0)                             # [J, hidden]

    # linear3 on concat([enc, x2], -1), weight pre-split W3 = [W3e | W3h]
    xx = (jnp.dot(enc, w3e_ref[...], preferred_element_type=f32)
          + jnp.dot(x2, w3h_ref[...], preferred_element_type=f32)
          + b3_ref[...])
    xx = jnp.where(xx >= 0, xx, 0.15 * xx)                           # LeakyReLU(0.15)

    # linear4 -> [J, 1], then mask fill
    scores = jnp.dot(xx, w4_ref[...], preferred_element_type=f32) + b4_ref[...]
    scores = jnp.where(mask == 0, jnp.float32(-1e9), scores)

    scores_ref[...] = scores.astype(scores_ref.dtype)
    xx_ref[...] = xx.astype(xx_ref.dtype)


# ---------------------------------------------------------------------------
# One-time parameter preparation (pre-transpose / pre-split / fold scale)
# ---------------------------------------------------------------------------
def prepare_params(params, *, num_heads, head_dim):
    E = num_heads * head_dim
    scale = 1.0 / math.sqrt(head_dim)

    win = params['win']                    # [3E, E]  (PyTorch in_proj_weight)
    bin_ = params['bin'].reshape(-1)       # [3E]

    def head_split(w_pt, b_vec, s):
        # w_pt: [E_out, Din] (PyTorch layout) -> per-head [H, Din, hd]
        w_t = (w_pt * s).T                                           # [Din, E_out]
        w_h = w_t.reshape(w_t.shape[0], num_heads, head_dim).transpose(1, 0, 2)
        b_h = (b_vec * s).reshape(num_heads, 1, head_dim)
        return w_h, b_h

    wq_h, bq_h = head_split(win[:E],       bin_[:E],       scale)  # scale folded into q
    wk_h, bk_h = head_split(win[E:2 * E],  bin_[E:2 * E],  1.0)
    wv_h, bv_h = head_split(win[2 * E:],   bin_[2 * E:],   1.0)

    return {
        'w1_t':   params['w1'].T,                                    # [ctx, E]
        'b1':     params['b1'].reshape(1, E),
        'wqkv_h': jnp.concatenate([wq_h, wk_h, wv_h], axis=0),       # [3H, E, hd]
        'bqkv_h': jnp.concatenate([bq_h, bk_h, bv_h], axis=0),       # [3H, 1, hd]
        'wout_h': params['wout'].T.reshape(num_heads, head_dim, E),  # [H, hd, E]
        'bout':   params['bout'].reshape(1, E),
        'w2_t':   params['w2'].T,                                    # [E, hidden]
        'b2':     params['b2'].reshape(1, -1),
        'w3e_t':  params['w3e'].T,                                   # [enc, hidden]
        'w3h_t':  params['w3h'].T,                                   # [hidden, hidden]
        'b3':     params['b3'].reshape(1, -1),
        'w4_t':   params['w4'].T,                                    # [hidden, 1]
        'b4':     params['b4'].reshape(1, 1),
    }


# ---------------------------------------------------------------------------
# Wrapper
# ---------------------------------------------------------------------------
def multi_head_attention_forward(enc, state, mask, prepared, *, num_heads, head_dim):
    B, J, enc_size = enc.shape
    ctx = state.shape[-1]
    hidden = prepared['w2_t'].shape[1]

    mask3 = mask.reshape(B, J, 1)

    weight_inputs = (prepared['w1_t'], prepared['b1'],
                     prepared['wqkv_h'], prepared['bqkv_h'],
                     prepared['wout_h'], prepared['bout'],
                     prepared['w2_t'], prepared['b2'],
                     prepared['w3e_t'], prepared['w3h_t'], prepared['b3'],
                     prepared['w4_t'], prepared['b4'])

    def resident_spec(arr):
        # Full-array block, constant index map -> DMA'd once, stays resident
        # across all grid steps.
        nd = arr.ndim
        return pl.BlockSpec(arr.shape, lambda b, _nd=nd: (0,) * _nd)

    in_specs = [
        pl.BlockSpec((None, J, enc_size), lambda b: (b, 0, 0)),   # enc (streamed)
        pl.BlockSpec((None, J, ctx),      lambda b: (b, 0, 0)),   # state (streamed)
        pl.BlockSpec((None, J, 1),        lambda b: (b, 0, 0)),   # mask (streamed)
    ] + [resident_spec(w) for w in weight_inputs]

    out_specs = (
        pl.BlockSpec((None, J, 1),      lambda b: (b, 0, 0)),     # scores
        pl.BlockSpec((None, J, hidden), lambda b: (b, 0, 0)),     # xx
    )

    scores3, xx = pl.pallas_call(
        functools.partial(mha_kernel, num_heads=num_heads, head_dim=head_dim),
        grid=(B,),
        out_shape=(jax.ShapeDtypeStruct((B, J, 1), jnp.float32),
                   jax.ShapeDtypeStruct((B, J, hidden), jnp.float32)),
        in_specs=in_specs,
        out_specs=out_specs,
        compiler_params=pltpu.CompilerParams(
            dimension_semantics=("parallel",)),
    )(enc, state, mask3, *weight_inputs)

    return scores3[..., 0], xx


# ---------------------------------------------------------------------------
# Plain-JAX reference mirroring the PyTorch forward (eval mode)
# ---------------------------------------------------------------------------
def reference_forward(enc, state, mask, params, *, num_heads, head_dim):
    E = num_heads * head_dim

    def lin(x, w, b):
        return jnp.einsum('bjd,od->bjo', x, w) + b

    x1 = lin(state, params['w1'], params['b1'][0])
    qkv = lin(x1, params['win'], params['bin'][0])
    q, k, v = qkv[..., :E], qkv[..., E:2 * E], qkv[..., 2 * E:]
    B, J, _ = x1.shape
    qh = q.reshape(B, J, num_heads, head_dim).transpose(0, 2, 1, 3)
    kh = k.reshape(B, J, num_heads, head_dim).transpose(0, 2, 1, 3)
    vh = v.reshape(B, J, num_heads, head_dim).transpose(0, 2, 1, 3)
    s = jnp.einsum('bhqd,bhkd->bhqk', qh, kh) / jnp.sqrt(jnp.float32(head_dim))
    p = jax.nn.softmax(s, axis=-1)
    o = jnp.einsum('bhqk,bhkd->bhqd', p, vh).transpose(0, 2, 1, 3).reshape(B, J, E)
    attn_out = lin(o, params['wout'], params['bout'][0])
    x2 = x1 + attn_out
    x2 = jax.nn.relu(lin(x2, params['w2'], params['b2'][0]))
    combined = jnp.concatenate([enc, x2], axis=-1)
    w3 = jnp.concatenate([params['w3e'], params['w3h']], axis=-1)
    xx = lin(combined, w3, params['b3'][0])
    xx = jnp.where(xx >= 0, xx, 0.15 * xx)
    scores = lin(xx, params['w4'], params['b4'][0])[..., 0]
    scores = jnp.where(mask == 0, -1e9, scores)
    return scores, xx


if __name__ == "__main__":
    # Small, module-consistent shapes.
    B, J = 2, 8
    encoder_size, context_size = 16, 12
    hidden_size, num_heads = 32, 2
    E = hidden_size * num_heads       # embed_dim of self-attention = 64
    head_dim = E // num_heads         # 32

    key = jax.random.PRNGKey(0)
    ks = jax.random.split(key, 16)
    f = jnp.float32

    enc = jax.random.normal(ks[0], (B, J, encoder_size), f)
    state = jax.random.normal(ks[1], (B, J, context_size), f)
    mask = (jnp.arange(J)[None, :] < 6).astype(f) * jnp.ones((B, 1), f)  # [B, J], zeros masked

    s = 0.1
    params = {
        'w1':  s * jax.random.normal(ks[2], (E, context_size), f),
        'b1':  s * jax.random.normal(ks[3], (1, E), f),
        'win': s * jax.random.normal(ks[4], (3 * E, E), f),
        'bin': s * jax.random.normal(ks[5], (1, 3 * E), f),
        'wout': s * jax.random.normal(ks[6], (E, E), f),
        'bout': s * jax.random.normal(ks[7], (1, E), f),
        'w2':  s * jax.random.normal(ks[8], (hidden_size, E), f),
        'b2':  s * jax.random.normal(ks[9], (1, hidden_size), f),
        'w3e': s * jax.random.normal(ks[10], (hidden_size, encoder_size), f),
        'w3h': s * jax.random.normal(ks[11], (hidden_size, hidden_size), f),
        'b3':  s * jax.random.normal(ks[12], (1, hidden_size), f),
        'w4':  s * jax.random.normal(ks[13], (1, hidden_size), f),
        'b4':  s * jax.random.normal(ks[14], (1, 1), f),
    }

    prepared = prepare_params(params, num_heads=num_heads, head_dim=head_dim)

    scores, xx = multi_head_attention_forward(
        enc, state, mask, prepared, num_heads=num_heads, head_dim=head_dim)
    jax.block_until_ready((scores, xx))

    ref_scores, ref_xx = reference_forward(
        enc, state, mask, params, num_heads=num_heads, head_dim=head_dim)
    assert scores.shape == (B, J) and xx.shape == (B, J, hidden_size)
    # Tolerance is slightly relaxed because the kernel uses the EUP approximate
    # reciprocal (pl.reciprocal(approx=True)) for the softmax normalization.
    assert jnp.allclose(scores, ref_scores, atol=2e-3, rtol=2e-3)
    assert jnp.allclose(xx, ref_xx, atol=2e-3, rtol=2e-3)

    print("KERNEL_OK")
</pallas_src>

<mosaic_0001>
module attributes {stable_mosaic.version = 11 : i64} {
  func.func @mha_kernel(%arg0: i32, %arg1: memref<1x8x16xf32, #tpu.memory_space<vmem>>, %arg2: memref<1x8x12xf32, #tpu.memory_space<vmem>>, %arg3: memref<1x8x1xf32, #tpu.memory_space<vmem>>, %arg4: memref<12x64xf32, #tpu.memory_space<vmem>>, %arg5: memref<1x64xf32, #tpu.memory_space<vmem>>, %arg6: memref<6x64x32xf32, #tpu.memory_space<vmem>>, %arg7: memref<6x1x32xf32, #tpu.memory_space<vmem>>, %arg8: memref<2x32x64xf32, #tpu.memory_space<vmem>>, %arg9: memref<1x64xf32, #tpu.memory_space<vmem>>, %arg10: memref<64x32xf32, #tpu.memory_space<vmem>>, %arg11: memref<1x32xf32, #tpu.memory_space<vmem>>, %arg12: memref<16x32xf32, #tpu.memory_space<vmem>>, %arg13: memref<32x32xf32, #tpu.memory_space<vmem>>, %arg14: memref<1x32xf32, #tpu.memory_space<vmem>>, %arg15: memref<32x1xf32, #tpu.memory_space<vmem>>, %arg16: memref<1x1xf32, #tpu.memory_space<vmem>>, %arg17: memref<1x8x1xf32, #tpu.memory_space<vmem>>, %arg18: memref<1x8x32xf32, #tpu.memory_space<vmem>>) attributes {dimension_semantics = [#tpu.dimension_semantics<parallel>], iteration_bounds = array<i64: 2>, scalar_prefetch = 0 : i64, scratch_operands = 0 : i64, tpu.core_type = #tpu.core_type<tc>, window_params = [{transform_indices = @transform_0, window_bounds = array<i64: 1, 8, 16>}, {transform_indices = @transform_1, window_bounds = array<i64: 1, 8, 12>}, {transform_indices = @transform_2, window_bounds = array<i64: 1, 8, 1>}, {pipeline_mode = #tpu.pipeline_mode<synchronous>, transform_indices = @transform_3, window_bounds = array<i64: 12, 64>}, {pipeline_mode = #tpu.pipeline_mode<synchronous>, transform_indices = @transform_4, window_bounds = array<i64: 1, 64>}, {pipeline_mode = #tpu.pipeline_mode<synchronous>, transform_indices = @transform_5, window_bounds = array<i64: 6, 64, 32>}, {pipeline_mode = #tpu.pipeline_mode<synchronous>, transform_indices = @transform_6, window_bounds = array<i64: 6, 1, 32>}, {pipeline_mode = #tpu.pipeline_mode<synchronous>, transform_indices = @transform_7, window_bounds = array<i64: 2, 32, 64>}, {pipeline_mode = #tpu.pipeline_mode<synchronous>, transform_indices = @transform_8, window_bounds = array<i64: 1, 64>}, {pipeline_mode = #tpu.pipeline_mode<synchronous>, transform_indices = @transform_9, window_bounds = array<i64: 64, 32>}, {pipeline_mode = #tpu.pipeline_mode<synchronous>, transform_indices = @transform_10, window_bounds = array<i64: 1, 32>}, {pipeline_mode = #tpu.pipeline_mode<synchronous>, transform_indices = @transform_11, window_bounds = array<i64: 16, 32>}, {pipeline_mode = #tpu.pipeline_mode<synchronous>, transform_indices = @transform_12, window_bounds = array<i64: 32, 32>}, {pipeline_mode = #tpu.pipeline_mode<synchronous>, transform_indices = @transform_13, window_bounds = array<i64: 1, 32>}, {pipeline_mode = #tpu.pipeline_mode<synchronous>, transform_indices = @transform_14, window_bounds = array<i64: 32, 1>}, {pipeline_mode = #tpu.pipeline_mode<synchronous>, transform_indices = @transform_15, window_bounds = array<i64: 1, 1>}, {transform_indices = @transform_16, window_bounds = array<i64: 1, 8, 1>}, {transform_indices = @transform_17, window_bounds = array<i64: 1, 8, 32>}]} {
    %c0 = arith.constant 0 : index
    %c0_0 = arith.constant 0 : index
    %c0_1 = arith.constant 0 : index
    %0 = vector.load %arg1[%c0, %c0_0, %c0_1] : memref<1x8x16xf32, #tpu.memory_space<vmem>>, vector<1x8x16xf32>
    %1 = vector.shape_cast %0 : vector<1x8x16xf32> to vector<8x16xf32>
    %c0_2 = arith.constant 0 : index
    %c0_3 = arith.constant 0 : index
    %c0_4 = arith.constant 0 : index
    %2 = vector.load %arg2[%c0_2, %c0_3, %c0_4] : memref<1x8x12xf32, #tpu.memory_space<vmem>>, vector<1x8x12xf32>
    %3 = vector.shape_cast %2 : vector<1x8x12xf32> to vector<8x12xf32>
    %c0_5 = arith.constant 0 : index
    %c0_6 = arith.constant 0 : index
    %c0_7 = arith.constant 0 : index
    %4 = vector.load %arg3[%c0_5, %c0_6, %c0_7] : memref<1x8x1xf32, #tpu.memory_space<vmem>>, vector<1x8x1xf32>
    %5 = vector.shape_cast %4 : vector<1x8x1xf32> to vector<8x1xf32>
    %c0_8 = arith.constant 0 : index
    %c0_9 = arith.constant 0 : index
    %6 = vector.load %arg4[%c0_8, %c0_9] : memref<12x64xf32, #tpu.memory_space<vmem>>, vector<12x64xf32>
    %cst = arith.constant dense<0.000000e+00> : vector<8x64xf32>
    %7 = tpu.matmul %3, %6, %cst {dimension_numbers = #tpu.dot_dimension_numbers<[1], [0], [0], [1], [0, 0, 1, 1], [], []>} : vector<8x12xf32>, vector<12x64xf32>, vector<8x64xf32> -> vector<8x64xf32>
    %c0_10 = arith.constant 0 : index
    %c0_11 = arith.constant 0 : index
    %8 = vector.load %arg5[%c0_10, %c0_11] : memref<1x64xf32, #tpu.memory_space<vmem>>, vector<1x64xf32>
    %9 = vector.broadcast %8 : vector<1x64xf32> to vector<8x64xf32>
    %10 = arith.addf %7, %9 : vector<8x64xf32>
    %c0_12 = arith.constant 0 : index
    %c0_13 = arith.constant 0 : index
    %c0_14 = arith.constant 0 : index
    %11 = vector.load %arg6[%c0_12, %c0_13, %c0_14] : memref<6x64x32xf32, #tpu.memory_space<vmem>>, vector<1x64x32xf32>
    %12 = vector.shape_cast %11 : vector<1x64x32xf32> to vector<64x32xf32>
    %cst_15 = arith.constant dense<0.000000e+00> : vector<8x32xf32>
    %13 = tpu.matmul %10, %12, %cst_15 {dimension_numbers = #tpu.dot_dimension_numbers<[1], [0], [0], [1], [0, 0, 1, 1], [], []>} : vector<8x64xf32>, vector<64x32xf32>, vector<8x32xf32> -> vector<8x32xf32>
    %c0_16 = arith.constant 0 : index
    %c0_17 = arith.constant 0 : index
    %c0_18 = arith.constant 0 : index
    %14 = vector.load %arg7[%c0_16, %c0_17, %c0_18] : memref<6x1x32xf32, #tpu.memory_space<vmem>>, vector<1x1x32xf32>
    %15 = vector.shape_cast %14 : vector<1x1x32xf32> to vector<1x32xf32>
    %16 = vector.broadcast %15 : vector<1x32xf32> to vector<8x32xf32>
    %17 = arith.addf %13, %16 : vector<8x32xf32>
    %c2 = arith.constant 2 : index
    %c0_19 = arith.constant 0 : index
    %c0_20 = arith.constant 0 : index
    %18 = vector.load %arg6[%c2, %c0_19, %c0_20] : memref<6x64x32xf32, #tpu.memory_space<vmem>>, vector<1x64x32xf32>
    %19 = vector.shape_cast %18 : vector<1x64x32xf32> to vector<64x32xf32>
    %cst_21 = arith.constant dense<0.000000e+00> : vector<8x32xf32>
    %20 = tpu.matmul %10, %19, %cst_21 {dimension_numbers = #tpu.dot_dimension_numbers<[1], [0], [0], [1], [0, 0, 1, 1], [], []>} : vector<8x64xf32>, vector<64x32xf32>, vector<8x32xf32> -> vector<8x32xf32>
    %c2_22 = arith.constant 2 : index
    %c0_23 = arith.constant 0 : index
    %c0_24 = arith.constant 0 : index
    %21 = vector.load %arg7[%c2_22, %c0_23, %c0_24] : memref<6x1x32xf32, #tpu.memory_space<vmem>>, vector<1x1x32xf32>
    %22 = vector.shape_cast %21 : vector<1x1x32xf32> to vector<1x32xf32>
    %23 = vector.broadcast %22 : vector<1x32xf32> to vector<8x32xf32>
    %24 = arith.addf %20, %23 : vector<8x32xf32>
    %c4 = arith.constant 4 : index
    %c0_25 = arith.constant 0 : index
    %c0_26 = arith.constant 0 : index
    %25 = vector.load %arg6[%c4, %c0_25, %c0_26] : memref<6x64x32xf32, #tpu.memory_space<vmem>>, vector<1x64x32xf32>
    %26 = vector.shape_cast %25 : vector<1x64x32xf32> to vector<64x32xf32>
    %cst_27 = arith.constant dense<0.000000e+00> : vector<8x32xf32>
    %27 = tpu.matmul %10, %26, %cst_27 {dimension_numbers = #tpu.dot_dimension_numbers<[1], [0], [0], [1], [0, 0, 1, 1], [], []>} : vector<8x64xf32>, vector<64x32xf32>, vector<8x32xf32> -> vector<8x32xf32>
    %c4_28 = arith.constant 4 : index
    %c0_29 = arith.constant 0 : index
    %c0_30 = arith.constant 0 : index
    %28 = vector.load %arg7[%c4_28, %c0_29, %c0_30] : memref<6x1x32xf32, #tpu.memory_space<vmem>>, vector<1x1x32xf32>
    %29 = vector.shape_cast %28 : vector<1x1x32xf32> to vector<1x32xf32>
    %30 = vector.broadcast %29 : vector<1x32xf32> to vector<8x32xf32>
    %31 = arith.addf %27, %30 : vector<8x32xf32>
    %cst_31 = arith.constant dense<0.000000e+00> : vector<8x8xf32>
    %32 = tpu.matmul %17, %24, %cst_31 {dimension_numbers = #tpu.dot_dimension_numbers<[1], [1], [0], [0], [0, 0, 1, 0], [], []>} : vector<8x32xf32>, vector<8x32xf32>, vector<8x8xf32> -> vector<8x8xf32>
    %cst_32 = arith.constant dense<0xFF800000> : vector<8xf32>
    %33 = vector.multi_reduction <maximumf>, %32, %cst_32 [1] : vector<8x8xf32> to vector<8xf32>
    %34 = vector.shape_cast %33 : vector<8xf32> to vector<8x1xf32>
    %35 = vector.broadcast %34 : vector<8x1xf32> to vector<8x8xf32>
    %36 = arith.subf %32, %35 : vector<8x8xf32>
    %37 = math.exp %36 : vector<8x8xf32>
    %cst_33 = arith.constant dense<0.000000e+00> : vector<8xf32>
    %38 = vector.multi_reduction <add>, %37, %cst_33 [1] : vector<8x8xf32> to vector<8xf32>
    %39 = vector.shape_cast %38 : vector<8xf32> to vector<8x1xf32>
    %40 = tpu.reciprocal %39 {approx = true} : vector<8x1xf32> -> vector<8x1xf32>
    %41 = vector.broadcast %40 : vector<8x1xf32> to vector<8x8xf32>
    %42 = arith.mulf %37, %41 : vector<8x8xf32>
    %cst_34 = arith.constant dense<0.000000e+00> : vector<8x32xf32>
    %43 = tpu.matmul %42, %31, %cst_34 {dimension_numbers = #tpu.dot_dimension_numbers<[1], [0], [0], [1], [0, 0, 1, 1], [], []>} : vector<8x8xf32>, vector<8x32xf32>, vector<8x32xf32> -> vector<8x32xf32>
    %c0_35 = arith.constant 0 : index
    %c0_36 = arith.constant 0 : index
    %c0_37 = arith.constant 0 : index
    %44 = vector.load %arg8[%c0_35, %c0_36, %c0_37] : memref<2x32x64xf32, #tpu.memory_space<vmem>>, vector<1x32x64xf32>
    %45 = vector.shape_cast %44 : vector<1x32x64xf32> to vector<32x64xf32>
    %cst_38 = arith.constant dense<0.000000e+00> : vector<8x64xf32>
    %46 = tpu.matmul %43, %45, %cst_38 {dimension_numbers = #tpu.dot_dimension_numbers<[1], [0], [0], [1], [0, 0, 1, 1], [], []>} : vector<8x32xf32>, vector<32x64xf32>, vector<8x64xf32> -> vector<8x64xf32>
    %c1 = arith.constant 1 : index
    %c0_39 = arith.constant 0 : index
    %c0_40 = arith.constant 0 : index
    %47 = vector.load %arg6[%c1, %c0_39, %c0_40] : memref<6x64x32xf32, #tpu.memory_space<vmem>>, vector<1x64x32xf32>
    %48 = vector.shape_cast %47 : vector<1x64x32xf32> to vector<64x32xf32>
    %cst_41 = arith.constant dense<0.000000e+00> : vector<8x32xf32>
    %49 = tpu.matmul %10, %48, %cst_41 {dimension_numbers = #tpu.dot_dimension_numbers<[1], [0], [0], [1], [0, 0, 1, 1], [], []>} : vector<8x64xf32>, vector<64x32xf32>, vector<8x32xf32> -> vector<8x32xf32>
    %c1_42 = arith.constant 1 : index
    %c0_43 = arith.constant 0 : index
    %c0_44 = arith.constant 0 : index
    %50 = vector.load %arg7[%c1_42, %c0_43, %c0_44] : memref<6x1x32xf32, #tpu.memory_space<vmem>>, vector<1x1x32xf32>
    %51 = vector.shape_cast %50 : vector<1x1x32xf32> to vector<1x32xf32>
    %52 = vector.broadcast %51 : vector<1x32xf32> to vector<8x32xf32>
    %53 = arith.addf %49, %52 : vector<8x32xf32>
    %c3 = arith.constant 3 : index
    %c0_45 = arith.constant 0 : index
    %c0_46 = arith.constant 0 : index
    %54 = vector.load %arg6[%c3, %c0_45, %c0_46] : memref<6x64x32xf32, #tpu.memory_space<vmem>>, vector<1x64x32xf32>
    %55 = vector.shape_cast %54 : vector<1x64x32xf32> to vector<64x32xf32>
    %cst_47 = arith.constant dense<0.000000e+00> : vector<8x32xf32>
    %56 = tpu.matmul %10, %55, %cst_47 {dimension_numbers = #tpu.dot_dimension_numbers<[1], [0], [0], [1], [0, 0, 1, 1], [], []>} : vector<8x64xf32>, vector<64x32xf32>, vector<8x32xf32> -> vector<8x32xf32>
    %c3_48 = arith.constant 3 : index
    %c0_49 = arith.constant 0 : index
    %c0_50 = arith.constant 0 : index
    %57 = vector.load %arg7[%c3_48, %c0_49, %c0_50] : memref<6x1x32xf32, #tpu.memory_space<vmem>>, vector<1x1x32xf32>
    %58 = vector.shape_cast %57 : vector<1x1x32xf32> to vector<1x32xf32>
    %59 = vector.broadcast %58 : vector<1x32xf32> to vector<8x32xf32>
    %60 = arith.addf %56, %59 : vector<8x32xf32>
    %c5 = arith.constant 5 : index
    %c0_51 = arith.constant 0 : index
    %c0_52 = arith.constant 0 : index
    %61 = vector.load %arg6[%c5, %c0_51, %c0_52] : memref<6x64x32xf32, #tpu.memory_space<vmem>>, vector<1x64x32xf32>
    %62 = vector.shape_cast %61 : vector<1x64x32xf32> to vector<64x32xf32>
    %cst_53 = arith.constant dense<0.000000e+00> : vector<8x32xf32>
    %63 = tpu.matmul %10, %62, %cst_53 {dimension_numbers = #tpu.dot_dimension_numbers<[1], [0], [0], [1], [0, 0, 1, 1], [], []>} : vector<8x64xf32>, vector<64x32xf32>, vector<8x32xf32> -> vector<8x32xf32>
    %c5_54 = arith.constant 5 : index
    %c0_55 = arith.constant 0 : index
    %c0_56 = arith.constant 0 : index
    %64 = vector.load %arg7[%c5_54, %c0_55, %c0_56] : memref<6x1x32xf32, #tpu.memory_space<vmem>>, vector<1x1x32xf32>
    %65 = vector.shape_cast %64 : vector<1x1x32xf32> to vector<1x32xf32>
    %66 = vector.broadcast %65 : vector<1x32xf32> to vector<8x32xf32>
    %67 = arith.addf %63, %66 : vector<8x32xf32>
    %cst_57 = arith.constant dense<0.000000e+00> : vector<8x8xf32>
    %68 = tpu.matmul %53, %60, %cst_57 {dimension_numbers = #tpu.dot_dimension_numbers<[1], [1], [0], [0], [0, 0, 1, 0], [], []>} : vector<8x32xf32>, vector<8x32xf32>, vector<8x8xf32> -> vector<8x8xf32>
    %cst_58 = arith.constant dense<0xFF800000> : vector<8xf32>
    %69 = vector.multi_reduction <maximumf>, %68, %cst_58 [1] : vector<8x8xf32> to vector<8xf32>
    %70 = vector.shape_cast %69 : vector<8xf32> to vector<8x1xf32>
    %71 = vector.broadcast %70 : vector<8x1xf32> to vector<8x8xf32>
    %72 = arith.subf %68, %71 : vector<8x8xf32>
    %73 = math.exp %72 : vector<8x8xf32>
    %cst_59 = arith.constant dense<0.000000e+00> : vector<8xf32>
    %74 = vector.multi_reduction <add>, %73, %cst_59 [1] : vector<8x8xf32> to vector<8xf32>
    %75 = vector.shape_cast %74 : vector<8xf32> to vector<8x1xf32>
    %76 = tpu.reciprocal %75 {approx = true} : vector<8x1xf32> -> vector<8x1xf32>
    %77 = vector.broadcast %76 : vector<8x1xf32> to vector<8x8xf32>
    %78 = arith.mulf %73, %77 : vector<8x8xf32>
    %cst_60 = arith.constant dense<0.000000e+00> : vector<8x32xf32>
    %79 = tpu.matmul %78, %67, %cst_60 {dimension_numbers = #tpu.dot_dimension_numbers<[1], [0], [0], [1], [0, 0, 1, 1], [], []>} : vector<8x8xf32>, vector<8x32xf32>, vector<8x32xf32> -> vector<8x32xf32>
    %c1_61 = arith.constant 1 : index
    %c0_62 = arith.constant 0 : index
    %c0_63 = arith.constant 0 : index
    %80 = vector.load %arg8[%c1_61, %c0_62, %c0_63] : memref<2x32x64xf32, #tpu.memory_space<vmem>>, vector<1x32x64xf32>
    %81 = vector.shape_cast %80 : vector<1x32x64xf32> to vector<32x64xf32>
    %cst_64 = arith.constant dense<0.000000e+00> : vector<8x64xf32>
    %82 = tpu.matmul %79, %81, %cst_64 {dimension_numbers = #tpu.dot_dimension_numbers<[1], [0], [0], [1], [0, 0, 1, 1], [], []>} : vector<8x32xf32>, vector<32x64xf32>, vector<8x64xf32> -> vector<8x64xf32>
    %83 = arith.addf %46, %82 : vector<8x64xf32>
    %84 = arith.addf %10, %83 : vector<8x64xf32>
    %c0_65 = arith.constant 0 : index
    %c0_66 = arith.constant 0 : index
    %85 = vector.load %arg9[%c0_65, %c0_66] : memref<1x64xf32, #tpu.memory_space<vmem>>, vector<1x64xf32>
    %86 = vector.broadcast %85 : vector<1x64xf32> to vector<8x64xf32>
    %87 = arith.addf %84, %86 : vector<8x64xf32>
    %c0_67 = arith.constant 0 : index
    %c0_68 = arith.constant 0 : index
    %88 = vector.load %arg10[%c0_67, %c0_68] : memref<64x32xf32, #tpu.memory_space<vmem>>, vector<64x32xf32>
    %cst_69 = arith.constant dense<0.000000e+00> : vector<8x32xf32>
    %89 = tpu.matmul %87, %88, %cst_69 {dimension_numbers = #tpu.dot_dimension_numbers<[1], [0], [0], [1], [0, 0, 1, 1], [], []>} : vector<8x64xf32>, vector<64x32xf32>, vector<8x32xf32> -> vector<8x32xf32>
    %c0_70 = arith.constant 0 : index
    %c0_71 = arith.constant 0 : index
    %90 = vector.load %arg11[%c0_70, %c0_71] : memref<1x32xf32, #tpu.memory_space<vmem>>, vector<1x32xf32>
    %91 = vector.broadcast %90 : vector<1x32xf32> to vector<8x32xf32>
    %92 = arith.addf %89, %91 : vector<8x32xf32>
    %cst_72 = arith.constant 0.000000e+00 : f32
    %93 = vector.broadcast %cst_72 : f32 to vector<8x32xf32>
    %94 = arith.maximumf %92, %93 : vector<8x32xf32>
    %c0_73 = arith.constant 0 : index
    %c0_74 = arith.constant 0 : index
    %95 = vector.load %arg12[%c0_73, %c0_74] : memref<16x32xf32, #tpu.memory_space<vmem>>, vector<16x32xf32>
    %cst_75 = arith.constant dense<0.000000e+00> : vector<8x32xf32>
    %96 = tpu.matmul %1, %95, %cst_75 {dimension_numbers = #tpu.dot_dimension_numbers<[1], [0], [0], [1], [0, 0, 1, 1], [], []>} : vector<8x16xf32>, vector<16x32xf32>, vector<8x32xf32> -> vector<8x32xf32>
    %c0_76 = arith.constant 0 : index
    %c0_77 = arith.constant 0 : index
    %97 = vector.load %arg13[%c0_76, %c0_77] : memref<32x32xf32, #tpu.memory_space<vmem>>, vector<32x32xf32>
    %cst_78 = arith.constant dense<0.000000e+00> : vector<8x32xf32>
    %98 = tpu.matmul %94, %97, %cst_78 {dimension_numbers = #tpu.dot_dimension_numbers<[1], [0], [0], [1], [0, 0, 1, 1], [], []>} : vector<8x32xf32>, vector<32x32xf32>, vector<8x32xf32> -> vector<8x32xf32>
    %99 = arith.addf %96, %98 : vector<8x32xf32>
    %c0_79 = arith.constant 0 : index
    %c0_80 = arith.constant 0 : index
    %100 = vector.load %arg14[%c0_79, %c0_80] : memref<1x32xf32, #tpu.memory_space<vmem>>, vector<1x32xf32>
    %101 = vector.broadcast %100 : vector<1x32xf32> to vector<8x32xf32>
    %102 = arith.addf %99, %101 : vector<8x32xf32>
    %cst_81 = arith.constant 0.000000e+00 : f32
    %103 = vector.broadcast %cst_81 : f32 to vector<8x32xf32>
    %104 = arith.cmpf oge, %102, %103 : vector<8x32xf32>
    %cst_82 = arith.constant 1.500000e-01 : f32
    %105 = vector.broadcast %cst_82 : f32 to vector<8x32xf32>
    %106 = arith.mulf %105, %102 : vector<8x32xf32>
    %107 = arith.select %104, %102, %106 : vector<8x32xi1>, vector<8x32xf32>
    %c0_83 = arith.constant 0 : index
    %c0_84 = arith.constant 0 : index
    %108 = vector.load %arg15[%c0_83, %c0_84] : memref<32x1xf32, #tpu.memory_space<vmem>>, vector<32x1xf32>
    %cst_85 = arith.constant dense<0.000000e+00> : vector<8x1xf32>
    %109 = tpu.matmul %107, %108, %cst_85 {dimension_numbers = #tpu.dot_dimension_numbers<[1], [0], [0], [1], [0, 0, 1, 1], [], []>} : vector<8x32xf32>, vector<32x1xf32>, vector<8x1xf32> -> vector<8x1xf32>
    %c0_86 = arith.constant 0 : index
    %c0_87 = arith.constant 0 : index
    %110 = vector.load %arg16[%c0_86, %c0_87] : memref<1x1xf32, #tpu.memory_space<vmem>>, vector<1x1xf32>
    %111 = vector.broadcast %110 : vector<1x1xf32> to vector<8x1xf32>
    %112 = arith.addf %109, %111 : vector<8x1xf32>
    %cst_88 = arith.constant 0.000000e+00 : f32
    %113 = vector.broadcast %cst_88 : f32 to vector<8x1xf32>
    %114 = arith.cmpf oeq, %5, %113 : vector<8x1xf32>
    %cst_89 = arith.constant -1.000000e+09 : f32
    %115 = vector.broadcast %cst_89 : f32 to vector<8x1xf32>
    %116 = arith.select %114, %115, %112 : vector<8x1xi1>, vector<8x1xf32>
    %c0_90 = arith.constant 0 : index
    %c0_91 = arith.constant 0 : index
    %c0_92 = arith.constant 0 : index
    %117 = vector.load %arg17[%c0_90, %c0_91, %c0_92] : memref<1x8x1xf32, #tpu.memory_space<vmem>>, vector<1x8x1xf32>
    %118 = vector.shape_cast %117 : vector<1x8x1xf32> to vector<8x1xf32>
    %119 = vector.shape_cast %116 : vector<8x1xf32> to vector<1x8x1xf32>
    tpu.vector_store %arg17[%c0_90, %c0_91, %c0_92], %119 {strides = array<i32>} : memref<1x8x1xf32, #tpu.memory_space<vmem>>, vector<1x8x1xf32>,
    %c0_93 = arith.constant 0 : index
    %c0_94 = arith.constant 0 : index
    %c0_95 = arith.constant 0 : index
    %120 = vector.load %arg18[%c0_93, %c0_94, %c0_95] : memref<1x8x32xf32, #tpu.memory_space<vmem>>, vector<1x8x32xf32>
    %121 = vector.shape_cast %120 : vector<1x8x32xf32> to vector<8x32xf32>
    %122 = vector.shape_cast %107 : vector<8x32xf32> to vector<1x8x32xf32>
    tpu.vector_store %arg18[%c0_93, %c0_94, %c0_95], %122 {strides = array<i32>} : memref<1x8x32xf32, #tpu.memory_space<vmem>>, vector<1x8x32xf32>,
    return
  }
  func.func @transform_0(%arg0: i32) -> (i32, i32, i32) {
    %c0_i32 = arith.constant 0 : i32
    %c0_i32_0 = arith.constant 0 : i32
    %c0_i32_1 = arith.constant 0 : i32
    return %arg0, %c0_i32, %c0_i32_0 : i32, i32, i32
  }
  func.func @transform_1(%arg0: i32) -> (i32, i32, i32) {
    %c0_i32 = arith.constant 0 : i32
    %c0_i32_0 = arith.constant 0 : i32
    %c0_i32_1 = arith.constant 0 : i32
    return %arg0, %c0_i32, %c0_i32_0 : i32, i32, i32
  }
  func.func @transform_2(%arg0: i32) -> (i32, i32, i32) {
    %c0_i32 = arith.constant 0 : i32
    %c0_i32_0 = arith.constant 0 : i32
    %c0_i32_1 = arith.constant 0 : i32
    return %arg0, %c0_i32, %c0_i32_0 : i32, i32, i32
  }
  func.func @transform_3(%arg0: i32) -> (i32, i32) {
    %c0_i32 = arith.constant 0 : i32
    %c0_i32_0 = arith.constant 0 : i32
    %c0_i32_1 = arith.constant 0 : i32
    return %c0_i32, %c0_i32_0 : i32, i32
  }
  func.func @transform_4(%arg0: i32) -> (i32, i32) {
    %c0_i32 = arith.constant 0 : i32
    %c0_i32_0 = arith.constant 0 : i32
    %c0_i32_1 = arith.constant 0 : i32
    return %c0_i32, %c0_i32_0 : i32, i32
  }
  func.func @transform_5(%arg0: i32) -> (i32, i32, i32) {
    %c0_i32 = arith.constant 0 : i32
    %c0_i32_0 = arith.constant 0 : i32
    %c0_i32_1 = arith.constant 0 : i32
    %c0_i32_2 = arith.constant 0 : i32
    return %c0_i32, %c0_i32_0, %c0_i32_1 : i32, i32, i32
  }
  func.func @transform_6(%arg0: i32) -> (i32, i32, i32) {
    %c0_i32 = arith.constant 0 : i32
    %c0_i32_0 = arith.constant 0 : i32
    %c0_i32_1 = arith.constant 0 : i32
    %c0_i32_2 = arith.constant 0 : i32
    return %c0_i32, %c0_i32_0, %c0_i32_1 : i32, i32, i32
  }
  func.func @transform_7(%arg0: i32) -> (i32, i32, i32) {
    %c0_i32 = arith.constant 0 : i32
    %c0_i32_0 = arith.constant 0 : i32
    %c0_i32_1 = arith.constant 0 : i32
    %c0_i32_2 = arith.constant 0 : i32
    return %c0_i32, %c0_i32_0, %c0_i32_1 : i32, i32, i32
  }
  func.func @transform_8(%arg0: i32) -> (i32, i32) {
    %c0_i32 = arith.constant 0 : i32
    %c0_i32_0 = arith.constant 0 : i32
    %c0_i32_1 = arith.constant 0 : i32
    return %c0_i32, %c0_i32_0 : i32, i32
  }
  func.func @transform_9(%arg0: i32) -> (i32, i32) {
    %c0_i32 = arith.constant 0 : i32
    %c0_i32_0 = arith.constant 0 : i32
    %c0_i32_1 = arith.constant 0 : i32
    return %c0_i32, %c0_i32_0 : i32, i32
  }
  func.func @transform_10(%arg0: i32) -> (i32, i32) {
    %c0_i32 = arith.constant 0 : i32
    %c0_i32_0 = arith.constant 0 : i32
    %c0_i32_1 = arith.constant 0 : i32
    return %c0_i32, %c0_i32_0 : i32, i32
  }
  func.func @transform_11(%arg0: i32) -> (i32, i32) {
    %c0_i32 = arith.constant 0 : i32
    %c0_i32_0 = arith.constant 0 : i32
    %c0_i32_1 = arith.constant 0 : i32
    return %c0_i32, %c0_i32_0 : i32, i32
  }
  func.func @transform_12(%arg0: i32) -> (i32, i32) {
    %c0_i32 = arith.constant 0 : i32
    %c0_i32_0 = arith.constant 0 : i32
    %c0_i32_1 = arith.constant 0 : i32
    return %c0_i32, %c0_i32_0 : i32, i32
  }
  func.func @transform_13(%arg0: i32) -> (i32, i32) {
    %c0_i32 = arith.constant 0 : i32
    %c0_i32_0 = arith.constant 0 : i32
    %c0_i32_1 = arith.constant 0 : i32
    return %c0_i32, %c0_i32_0 : i32, i32
  }
  func.func @transform_14(%arg0: i32) -> (i32, i32) {
    %c0_i32 = arith.constant 0 : i32
    %c0_i32_0 = arith.constant 0 : i32
    %c0_i32_1 = arith.constant 0 : i32
    return %c0_i32, %c0_i32_0 : i32, i32
  }
  func.func @transform_15(%arg0: i32) -> (i32, i32) {
    %c0_i32 = arith.constant 0 : i32
    %c0_i32_0 = arith.constant 0 : i32
    %c0_i32_1 = arith.constant 0 : i32
    return %c0_i32, %c0_i32_0 : i32, i32
  }
  func.func @transform_16(%arg0: i32) -> (i32, i32, i32) {
    %c0_i32 = arith.constant 0 : i32
    %c0_i32_0 = arith.constant 0 : i32
    %c0_i32_1 = arith.constant 0 : i32
    return %arg0, %c0_i32, %c0_i32_0 : i32, i32, i32
  }
  func.func @transform_17(%arg0: i32) -> (i32, i32, i32) {
    %c0_i32 = arith.constant 0 : i32
    %c0_i32_0 = arith.constant 0 : i32
    %c0_i32_1 = arith.constant 0 : i32
    return %arg0, %c0_i32, %c0_i32_0 : i32, i32, i32
  }
}

</mosaic_0001>

<bundles_post_ra>
// kernel: tpu_custom_call.1
= control target key start
LH: loop header
LB: loop body
LE: loop exit
PB: predicated region body
PF: predicated region fallthrough
CT: control target
= control target key end

     0   :  { %s1966_s0 = inlined_call_operand.vmem [shape: f32[2,8,16], index: 0, kind: input, shape index: {}]   ;;  %s1967_s1 = inlined_call_operand.vmem [shape: f32[2,8,12], index: 1, kind: input, shape index: {}]   ;;  %s1968_s2 = inlined_call_operand.vmem [shape: f32[2,8,1], index: 2, kind: input, shape index: {}]   ;;  %s1969_s3 = inlined_call_operand.vmem [shape: f32[12,64], index: 3, kind: input, shape index: {}]   ;;  %s1970_s4 = inlined_call_operand.vmem [shape: f32[1,64], index: 4, kind: input, shape index: {}]   ;;  %s1971_s5 = inlined_call_operand.vmem [shape: f32[6,64,32], index: 5, kind: input, shape index: {}]   ;;  %s1972_s6 = inlined_call_operand.vmem [shape: f32[6,1,32], index: 6, kind: input, shape index: {}]   ;;  %s1973_s7 = inlined_call_operand.vmem [shape: f32[2,32,64], index: 7, kind: input, shape index: {}]   ;;  %s1974_s8 = inlined_call_operand.vmem [shape: f32[1,64], index: 8, kind: input, shape index: {}]   ;;  %s1975_s9 = inlined_call_operand.vmem [shape: f32[64,32], index: 9, kind: input, shape index: {}]   ;;  %s1976_s10 = inlined_call_operand.vmem [shape: f32[1,32], index: 10, kind: input, shape index: {}]   ;;  %s1977_s11 = inlined_call_operand.vmem [shape: f32[16,32], index: 11, kind: input, shape index: {}]   ;;  %s1978_s12 = inlined_call_operand.vmem [shape: f32[32,32], index: 12, kind: input, shape index: {}]   ;;  %s1979_s13 = inlined_call_operand.vmem [shape: f32[1,32], index: 13, kind: input, shape index: {}]   ;;  %s1980_s14 = inlined_call_operand.vmem [shape: f32[32,1], index: 14, kind: input, shape index: {}]   ;;  %s1981_s15 = inlined_call_operand.<no memory space> [shape: f32[1,1], index: 15, kind: input, shape index: {}]   ;;  %s1982_s16 = inlined_call_operand.vmem [shape: f32[2,8,1], index: 16, kind: output, shape index: {0}]   ;;  %s1983_s17 = inlined_call_operand.hbm [shape: f32[2,8,32], index: 17, kind: output, shape index: {1}]  }
   0x1   :  { %1989 = sst [smem:[#allocation11_spill]] %s1966_s0  ;;  %v23_v0 = vstv %s1981_s15 }
   0x2   :  { %1990 = sst [smem:[#allocation12_spill]] %s1967_s1  ;;  %24 = vst [vmem:[#allocation2] sm:$0x1] %v23_v0 }
   0x3   :  { %1991 = sst [smem:[#allocation13_spill]] %s1969_s3 }
   0x4   :  { %1992 = sst [smem:[#allocation14_spill]] %s1970_s4 }
   0x5   :  { %1993 = sst [smem:[#allocation15_spill]] %s1971_s5 }
   0x6   :  { %1994 = sst [smem:[#allocation16_spill]] %s1972_s6 }
   0x7   :  { %25 = vsyncpa [#allocation4], 0 }
   0x8   :  { %27 = vsyncpa [#allocation4 + $0x1], 0  ;;  %s1577_s26 = smov 0   ;;  %s1579_s27 = smov 0  }
   0x9   :  { %s1581_s28 = smov 0   ;;  %s1583_s29 = smov 0  }
   0xa LB: > { %1995 = sst [smem:[#allocation6_spill]] %s1470_s26  ;;  %s1598_s15 = sadd.s32 4294967295, %s1482_s29   ;;  %s1482_s29 = sphi %s1583_s29, %s2010_s29   ;;  %s1478_s28 = sphi %s1581_s28, %s2012_s28   ;;  %s1474_s27 = sphi %s1579_s27, %s2014_s27   ;;  %s1470_s26 = sphi %s1577_s26, %s2013_s26  }
   0xb   : > { %1996 = sst [smem:[#allocation7_spill]] %s1478_s28  ;;  %s1280_s0 = sadd.s32 4294967294, %s1482_s29  }
   0xc   : > { %s1602_s30 = sadd.s32 1, %s1482_s29   ;;  %s417_s18 = sadd.s32 1, %s1478_s28 }
   0xd   : > { %1997 = sst [smem:[#allocation8_spill]] %s1602_s30  ;;  %s414_s19 = ssub.s32 %s1482_s29, %s1602_s30 }
   0xe   : > { %p427_p0 = scmp.ne.s32.totalorder %s1478_s28, %s1474_s27  ;;  %p415_p1 = scmp.eq.s32.totalorder %s414_s19, 0 }
   0xf   : > { %p428_p2 = scmp.eq.s32.totalorder %s1598_s15, 1  ;;  %p433_p3 = scmp.ne.s32.totalorder %s1474_s27, %s1470_s26 }
  0x10   : > { %p434_p4 = scmp.eq.s32.totalorder %s1280_s0, 1  ;;  %p1283_p7 = scmp.ge.s32.totalorder %s1482_s29, 1 }
  0x11   : > { %s1613_s1 = scalar_select %p415_p1, %s1478_s28, %s417_s18  }
  0x12   : > { %p1615_p5 = por %p428_p2, %p427_p0  ;;  %p1619_p6 = por %p434_p4, %p433_p3 }
  0x13   : > { %1998 = sst [smem:[#allocation9_spill]] %s1613_s1  ;;  %p512_p8 = scmp.lt.s32.totalorder %s1482_s29, 3 }
  0x14   : > { %s2000_s21 = scalar_select %p1619_p6, 1, 0 }
  0x15   : > { %p513_p9 = pnand %p1283_p7, %p512_p8 }
  0x16   : > { %2001 = sst [smem:[#allocation10_spill]] %s2000_s21  ;;  %p575_p10 = scmp.lt.s32.totalorder (!%p513_p9), %s1598_s15, 1 }
  0x17   : > { %516 = sbr.rel (%p513_p9) target bundleno = 1732 (0x6c4), region = 84  ;;  %s2002_s3 = sld [smem:[#allocation13_spill]] (!%p513_p9) }
  0x18   : > { %s2003_s5 = sld [smem:[#allocation15_spill]] (!%p513_p9)  ;;  %s1359_s26 = sshll.u32 (!%p513_p9), %s1598_s15, 3 }
  0x19   : > { %s2004_s18 = sld [smem:[#allocation12_spill]] (!%p513_p9) }
  0x1a   : > { %s2005_s4 = sld [smem:[#allocation14_spill]] (!%p513_p9) }
  0x1b   : > { %s2006_s6 = sld [smem:[#allocation16_spill]] (!%p513_p9) }
  0x1c   : > { %vm604_vm0 = vcmask 1043456   ;;  %s576_s23 = scalar_select %p575_p10, %s1598_s15, 1  ;;  %vm600_vm1 = vcmask 97280   ;;  %vm640_vm2 = vcmask 523264   ;;  %vm732_vm3 = vcmask 261120  }
  0x1d   : > { %v595_v1 = vld [vmem:[%s2002_s3 + $0x8] sm:$0xf]  ;;  %v594_v2 = vld [vmem:[%s2002_s3] sm:$0xff]  ;;  %vm759_vm4 = vcmask 64512   ;;  %vm1082_vm5 = vcmask 130048   ;;  %s1440_s15 = scalar_lea.hbm %s1983_s17, 16 }
  0x1e   : > { %1289 = vmatpush.msk.msra.mxu0 %vm604_vm0, %v595_v1  ;;  %v635_v3 = vld [vmem:[%s2003_s5 + $0x38] sm:$0xff]  ;;  %v634_v6 = vld [vmem:[%s2003_s5 + $0x30] sm:$0xff]  ;;  %v633_v9 = vld [vmem:[%s2003_s5 + $0x28] sm:$0xff]  ;;  %s1657_s30 = sshll.u32 %s576_s23, 3  ;;  %s2007_s23 = sld [smem:[#allocation11_spill]] }
  0x1f   : > { %v1299_v4 = vld [vmem:[%s2003_s5 + $0xb8] sm:$0xff]  ;;  %652 = vmatpush.msra.mxu1 %v635_v3  ;;  %v1298_v7 = vld [vmem:[%s2003_s5 + $0xb0] sm:$0xff]  ;;  %v1297_v10 = vld [vmem:[%s2003_s5 + $0xa8] sm:$0xff]  ;;  %s582_s21 = scalar_lea.vmem %s2004_s18, %s1657_s30  ;;  %s572_s18 = sand.u32 1, %s1474_s27  }
  0x20   : > { %v1309_v5 = vld [vmem:[%s2003_s5 + $0x138] sm:$0xff]  ;;  %686 = vmatpush.msra.mxu2 %v1299_v4  ;;  %v1308_v8 = vld [vmem:[%s2003_s5 + $0x130] sm:$0xff]  ;;  %623 = vmatpush.msra.mxu0 %v594_v2  ;;  %v1307_v11 = vld [vmem:[%s2003_s5 + $0x128] sm:$0xff]  ;;  %s1155_s24 = scalar_lea.sflag [#allocation4], %s572_s18 }
  0x21   : > { %720 = vmatpush.msra.mxu3 %v1309_v5  ;;  %653 = vmatpush.msra.mxu1 %v634_v6  ;;  %v632_v12 = vld [vmem:[%s2003_s5 + $0x20] sm:$0xff]  ;;  %v631_v16 = vld [vmem:[%s2003_s5 + $0x18] sm:$0xff]  ;;  %v630_v19 = vld [vmem:[%s2003_s5 + $0x10] sm:$0xff] }
  0x22   : > { %687 = vmatpush.msra.mxu2 %v1298_v7  ;;  %v1296_v13 = vld [vmem:[%s2003_s5 + $0xa0] sm:$0xff]  ;;  %v1295_v17 = vld [vmem:[%s2003_s5 + $0x98] sm:$0xff]  ;;  %v1294_v20 = vld [vmem:[%s2003_s5 + $0x90] sm:$0xff] }
  0x23   : > { %721 = vmatpush.msra.mxu3 %v1308_v8  ;;  %v592_v14 = vld [vmem:[%s582_s21] sm:$0xff]  ;;  %654 = vmatpush.msra.mxu1 %v633_v9  ;;  %v1305_v18 = vld [vmem:[%s2003_s5 + $0x118] sm:$0xff]  ;;  %v1304_v21 = vld [vmem:[%s2003_s5 + $0x110] sm:$0xff]  ;;  %s1284_s21 = sshll.u32 %s572_s18, 3 }
  0x24   : > { %688 = vmatpush.msra.mxu2 %v1297_v10  ;;  %v1306_v15 = vld [vmem:[%s2003_s5 + $0x120] sm:$0xff]  ;;  %1290 = vmatmul.msk.f32.vlgmr.msra.gmra.mxu0 %vm600_vm1, %v592_v14  ;;  %v629_v22 = vld [vmem:[%s2003_s5 + $0x8] sm:$0xff]  ;;  %v1322_v28 = vld [vmem:[%s2003_s5 + $0x78] sm:$0xff]  ;;  %s578_s22 = scalar_lea.vmem %s2007_s23, %s1657_s30  ;;  %s574_s1 = scalar_lea.vmem [#allocation3], %s1284_s21 }
  0x25   : > { %722 = vmatpush.msra.mxu3 %v1307_v11  ;;  %655 = vmatpush.msra.mxu1 %v632_v12  ;;  %v1293_v23 = vld [vmem:[%s2003_s5 + $0x88] sm:$0xff]  ;;  %v628_v25 = vld [vmem:[%s2003_s5] sm:$0xff]  ;;  %v1332_v29 = vld [vmem:[%s2003_s5 + $0xf8] sm:$0xff]  ;;  %s1168_s23 = scalar_lea.hbm %s1983_s17, %s1359_s26 }
  0x26   : > { %689 = vmatpush.msra.mxu2 %v1296_v13  ;;  %v1303_v24 = vld [vmem:[%s2003_s5 + $0x108] sm:$0xff]  ;;  %v1292_v26 = vld [vmem:[%s2003_s5 + $0x80] sm:$0xff]  ;;  %v1342_v30 = vld [vmem:[%s2003_s5 + $0x178] sm:$0xff]  ;;  %s1172_s3 = sshll.u32 %s1168_s23, 4  ;;  %s1173_s3 = int_to_ptr.hbm [resolvable:$true] %s1172_s3 }
  0x27   : > { %723 = vmatpush.msra.mxu3 %v1306_v15  ;;  %656 = vmatpush.msra.mxu1 %v631_v16  ;;  %v1302_v27 = vld [vmem:[%s2003_s5 + $0x100] sm:$0xff]  ;;  %v1321_v31 = vld [vmem:[%s2003_s5 + $0x70] sm:$0xff]  ;;  %v1320_v34 = vld [vmem:[%s2003_s5 + $0x68] sm:$0xff]  ;;  %s1434_s25 = sshra.s32 %s1173_s3, 4  ;;  %s1435_s25 = int_to_ptr.hbm [resolvable:$true] %s1434_s25 }
  0x28   : > { %690 = vmatpush.msra.mxu2 %v1295_v17  ;;  %v1331_v32 = vld [vmem:[%s2003_s5 + $0xf0] sm:$0xff]  ;;  %v1330_v35 = vld [vmem:[%s2003_s5 + $0xe8] sm:$0xff]  ;;  %v1319_v37 = vld [vmem:[%s2003_s5 + $0x60] sm:$0xff]  ;;  %s1436_s0 = scalar_lea.hbm %s1435_s25, 8  ;;  %p1441_p0 = scmp.lt.s32.totalorder %s1435_s25, %s1983_s17 }
  0x29   : > { %724 = vmatpush.msra.mxu3 %v1305_v18  ;;  %657 = vmatpush.msra.mxu1 %v630_v19  ;;  %v1341_v33 = vld [vmem:[%s2003_s5 + $0x170] sm:$0xff]  ;;  %v1340_v36 = vld [vmem:[%s2003_s5 + $0x168] sm:$0xff]  ;;  %v1329_v38 = vld [vmem:[%s2003_s5 + $0xe0] sm:$0xff]  ;;  %p1437_p11 = scmp.ne.s32.totalorder %s1435_s25, %s1436_s0  ;;  %p1442_p1 = scmp.lt.s32.totalorder %s1440_s15, %s1436_s0 }
  0x2a   : > { %691 = vmatpush.msra.mxu2 %v1294_v20  ;;  %v1339_v39 = vld [vmem:[%s2003_s5 + $0x160] sm:$0xff]  ;;  %v1318_v40 = vld [vmem:[%s2003_s5 + $0x58] sm:$0xff]  ;;  %v1317_v43 = vld [vmem:[%s2003_s5 + $0x50] sm:$0xff] }
  0x2b   : > { %725 = vmatpush.msra.mxu3 %v1304_v21  ;;  %658 = vmatpush.msra.mxu1 %v629_v22  ;;  %v1328_v41 = vld [vmem:[%s2003_s5 + $0xd8] sm:$0xff]  ;;  %v1327_v44 = vld [vmem:[%s2003_s5 + $0xd0] sm:$0xff]  ;;  %v1316_v46 = vld [vmem:[%s2003_s5 + $0x48] sm:$0xff]  ;;  %p1438_p12 = pnand %p1437_p11, %p1615_p5  ;;  %p1443_p2 = por %p1442_p1, %p1441_p0 }
  0x2c   : > { %692 = vmatpush.msra.mxu2 %v1293_v23  ;;  %v1338_v42 = vld [vmem:[%s2003_s5 + $0x158] sm:$0xff]  ;;  %v1337_v45 = vld [vmem:[%s2003_s5 + $0x150] sm:$0xff]  ;;  %v1326_v47 = vld [vmem:[%s2003_s5 + $0xc8] sm:$0xff] }
  0x2d   : > { %726 = vmatpush.msra.mxu3 %v1303_v24  ;;  %659 = vmatpush.msra.mxu1 %v628_v25  ;;  %v1336_v48 = vld [vmem:[%s2003_s5 + $0x148] sm:$0xff]  ;;  %v1315_v49 = vld [vmem:[%s2003_s5 + $0x40] sm:$0xff]  ;;  %v797_v10 = vld [vmem:[%s1973_s7 + $0x18] sm:$0xff]  ;;  %p1439_p13 = pneg %p1438_p12 }
  0x2e   : > { %693 = vmatpush.msra.mxu2 %v1292_v26  ;;  %v1325_v50 = vld [vmem:[%s2003_s5 + $0xc0] sm:$0xff]  ;;  %v796_v11 = vld [vmem:[%s1973_s7 + $0x10] sm:$0xff]  ;;  %v795_v12 = vld [vmem:[%s1973_s7 + $0x8] sm:$0xff] }
  0x2f   : > { %727 = vmatpush.msra.mxu3 %v1302_v27  ;;  %820 = vmatpush.msrb.mxu1 %v1322_v28  ;;  %v1335_v51 = vld [vmem:[%s2003_s5 + $0x140] sm:$0xff]  ;;  %p1444_p3 = pnand %p1443_p2, %p1439_p13 }
  0x30   : > { %854 = vmatpush.msrb.mxu2 %v1332_v29  ;;  %v1401_v52 = vld [vmem:[%s2005_s4] ss:$0 sm:$0xff]  ;;  %v1403_v55 = vld [vmem:[%s2006_s6 + $0x2] ss:$0 sm:$0xff]  ;;  %v1404_v56 = vld [vmem:[%s2006_s6 + $0x4] ss:$0 sm:$0xff] }
  0x31   : > { %888 = vmatpush.msrb.mxu3 %v1342_v30  ;;  %821 = vmatpush.msrb.mxu1 %v1321_v31  ;;  %v1402_v57 = vld [vmem:[%s2006_s6] ss:$0 sm:$0xff]  ;;  %v1406_v0 = vld [vmem:[%s2006_s6 + $0x3] ss:$0 sm:$0xff]  ;;  %v1407_v14 = vld [vmem:[%s2006_s6 + $0x5] ss:$0 sm:$0xff] }
  0x32   : > { %855 = vmatpush.msrb.mxu2 %v1331_v32  ;;  %v1405_v19 = vld [vmem:[%s2006_s6 + $0x1] ss:$0 sm:$0xff]  ;;  %v1351_v31 = vld [vmem:[%s1973_s7 + $0x38] sm:$0xff]  ;;  %v1350_v32 = vld [vmem:[%s1973_s7 + $0x30] sm:$0xff] }
  0x33   : > { %889 = vmatpush.msrb.mxu3 %v1341_v33  ;;  %822 = vmatpush.msrb.mxu1 %v1320_v34  ;;  %v794_v22 = vld [vmem:[%s1973_s7] sm:$0xff]  ;;  %v1349_v33 = vld [vmem:[%s1973_s7 + $0x28] sm:$0xff] }
  0x34   : > { %856 = vmatpush.msrb.mxu2 %v1330_v35 }
  0x35   : > { %890 = vmatpush.msrb.mxu3 %v1340_v36  ;;  %823 = vmatpush.msrb.mxu1 %v1319_v37  ;;  %v1348_v37 = vld [vmem:[%s1973_s7 + $0x20] sm:$0xff] }
  0x36   : > { %857 = vmatpush.msrb.mxu2 %v1329_v38  ;;  %v1024_v38 = vld [vmem:[%s1975_s9 + $0x38] sm:$0xff] }
  0x37   : > { %891 = vmatpush.msrb.mxu3 %v1339_v39  ;;  %824 = vmatpush.msrb.mxu1 %v1318_v40  ;;  %v1023_v39 = vld [vmem:[%s1975_s9 + $0x30] sm:$0xff]  ;;  %v1022_v40 = vld [vmem:[%s1975_s9 + $0x28] sm:$0xff] }
  0x38   : > { %858 = vmatpush.msrb.mxu2 %v1328_v41  ;;  %v1021_v41 = vld [vmem:[%s1975_s9 + $0x20] sm:$0xff] }
  0x39   : > { %892 = vmatpush.msrb.mxu3 %v1338_v42  ;;  %825 = vmatpush.msrb.mxu1 %v1317_v43  ;;  %v1020_v43 = vld [vmem:[%s1975_s9 + $0x18] sm:$0xff] }
  0x3a   : > { %859 = vmatpush.msrb.mxu2 %v1327_v44  ;;  %v1019_v44 = vld [vmem:[%s1975_s9 + $0x10] sm:$0xff] }
  0x3b   : > { %893 = vmatpush.msrb.mxu3 %v1337_v45  ;;  %826 = vmatpush.msrb.mxu1 %v1316_v46  ;;  %v1018_v45 = vld [vmem:[%s1975_s9 + $0x8] sm:$0xff]  ;;  %v1017_v46 = vld [vmem:[%s1975_s9] sm:$0xff] }
  0x3c   : > { %860 = vmatpush.msrb.mxu2 %v1326_v47  ;;  %v1058_v47 = vld [vmem:[%s1978_s12 + $0x18] sm:$0xff] }
  0x3d   : > { %894 = vmatpush.msrb.mxu3 %v1336_v48  ;;  %827 = vmatpush.msrb.mxu1 %v1315_v49 }
  0x3e   : > { %861 = vmatpush.msrb.mxu2 %v1325_v50 }
  0x3f   : > { %895 = vmatpush.msrb.mxu3 %v1335_v51  ;;  %v1408_v51 = vld [vmem:[%s1974_s8] ss:$0 sm:$0xff] }
  0xa1   : > { %v625_v53 = vpop.f32.mrf.mxu0 }
  0xa2   : > { %v1786_v54 = vadd.f32 %v1401_v52, %v625_v53 }
  0xa4   : > { %1291 = vmatmul.msk.f32.vlgmr.msra.gmra.mxu1 %vm640_vm2, %v1786_v54  ;;  %1301 = vmatmul.msk.f32.vlgmr.msra.gmra.mxu2 %vm640_vm2, %v1786_v54 }
  0xa5   : > { %1311 = vmatmul.msk.f32.vlgmr.msra.gmra.mxu3 %vm640_vm2, %v1786_v54  ;;  %1003 = vmatpush.msra.mxu2 %v797_v10 }
  0xa6   : > { %980 = vmatpush.msra.mxu1 %v1351_v31  ;;  %1040 = vmatpush.msra.mxu3 %v1024_v38 }
  0xa7   : > { %1004 = vmatpush.msra.mxu2 %v796_v11 }
  0xa8   : > { %981 = vmatpush.msra.mxu1 %v1350_v32  ;;  %1041 = vmatpush.msra.mxu3 %v1023_v39 }
  0xa9   : > { %1005 = vmatpush.msra.mxu2 %v795_v12 }
  0xaa   : > { %982 = vmatpush.msra.mxu1 %v1349_v33  ;;  %1042 = vmatpush.msra.mxu3 %v1022_v40 }
  0xab   : > { %1006 = vmatpush.msra.mxu2 %v794_v22 }
  0xac   : > { %1324 = vmatmul.msk.f32.vlgmr.msrb.gmra.mxu1 %vm640_vm2, %v1786_v54  ;;  %1334 = vmatmul.msk.f32.vlgmr.msrb.gmra.mxu2 %vm640_vm2, %v1786_v54 }
  0xad   : > { %1344 = vmatmul.msk.f32.vlgmr.msrb.gmra.mxu3 %vm640_vm2, %v1786_v54  ;;  %983 = vmatpush.msra.mxu1 %v1348_v37 }
  0xae   : > { %1043 = vmatpush.msra.mxu3 %v1021_v41 }
  0xb0   : > { %1044 = vmatpush.msra.mxu3 %v1020_v43 }
  0xb2   : > { %1045 = vmatpush.msra.mxu3 %v1019_v44 }
  0xb4   : > { %1046 = vmatpush.msra.mxu3 %v1018_v45 }
  0xb6   : > { %1047 = vmatpush.msra.mxu3 %v1017_v46 }
 0x121   : > { %v661_v59 = vpop.f32.mrf.mxu1 }
 0x122   : > { %v662_v63 = vadd.f32 %v1402_v57, %v661_v59  ;;  %v1054_v57 = vld [vmem:[%s1977_s11 + $0x8] sm:$0xff]  ;;  %v591_v59 = vld [vmem:[%s578_s22] sm:$0xff]  ;;  %s1170_s22 = sshll.u32 %s574_s1, 4  ;;  %s1171_s22 = int_to_ptr.vmem [resolvable:$true] %s1170_s22 }
 0x123   : > { %1100 = vmatpush.msrb.mxu1 %v1054_v57 }
 0x127   : > { %v695_v58 = vpop.f32.mrf.mxu2 }
 0x128   : > { %v696_v60 = vadd.f32 %v1403_v55, %v695_v58  ;;  %v729_v61 = vpop.f32.mrf.mxu3  ;;  %v1057_v55 = vld [vmem:[%s1978_s12 + $0x10] sm:$0xff]  ;;  %v1053_v58 = vld [vmem:[%s1977_s11] sm:$0xff] }
 0x129   : > { %v730_v62 = vadd.f32 %v1404_v56, %v729_v61  ;;  %v829_v20 = vpop.f32.mrf.mxu1  ;;  %v1056_v56 = vld [vmem:[%s1978_s12 + $0x8] sm:$0xff]  ;;  %1101 = vmatpush.msrb.mxu1 %v1053_v58 }
 0x12a   : > { %1312 = vmatpush.xpose.msk.msrb.mxu0 %vm732_vm3, %v696_v60  ;;  %v830_v21 = vadd.f32 %v1405_v19, %v829_v20  ;;  %v1409_v60 = vld [vmem:[%s1976_s10] ss:$0 sm:$0xff] }
 0x12d   : > { %1313 = vmatmul.msk.f32.vlgmr.msrb.gmra.mxu0 %vm732_vm3, %v662_v63 }
 0x12e   : > { %789 = vmatpush.msra.mxu0 %v730_v62 }
 0x12f   : > { %v863_v1 = vpop.f32.mrf.mxu2 }
 0x130   : > { %v864_v2 = vadd.f32 %v1406_v0, %v863_v1  ;;  %v897_v15 = vpop.f32.mrf.mxu3  ;;  %v1117_v0 = vld [vmem:[%s1980_s14 + $0x18] sm:$0xff]  ;;  %v1116_v1 = vld [vmem:[%s1980_s14 + $0x10] sm:$0xff] }
 0x131   : > { %v898_v18 = vadd.f32 %v1407_v14, %v897_v15  ;;  %1137 = vmatpush.msrb.mxu2 %v1117_v0 }
 0x132   : > { %1345 = vmatpush.xpose.msk.msrb.mxu0 %vm732_vm3, %v864_v2  ;;  %v1115_v2 = vld [vmem:[%s1980_s14 + $0x8] sm:$0xff] }
 0x133   : > { %1138 = vmatpush.msrb.mxu2 %v1116_v1 }
 0x135   : > { %1139 = vmatpush.msrb.mxu2 %v1115_v2 }
 0x1aa   : > { %v756_v3 = vpop.f32.mrf.mxu0 }
 0x1ab   : > { %v760_v4 = vsel %vm759_vm4, %v756_v3, -inf }
 0x1ac   : > { %761 = vmax.xlane.f32.xlu0 %v760_v4 }
 0x21f   : > { %v762_v5 = vpop.xlane.xlu0 %761 }
 0x220   : > { %v763_v6 = vsub.f32 %v756_v3, %v762_v5  ;;  %v1114_v3 = vld [vmem:[%s1980_s14] sm:$0xff] }
 0x221   : > { %1140 = vmatpush.msrb.mxu2 %v1114_v3  ;;  %v1410_v5 = vld [vmem:[%s1979_s13] ss:$0 sm:$0xff] }
 0x222   : > { %v764_v7 = vmul.f32 1.442695, %v763_v6 }
 0x224   : > { %1412 = vpow2.f32 %v764_v7 }
 0x22a   : > { %v1413_v8 = vpop.eup %1412 }
 0x22b   : > { %v766_v9 = vsel %vm759_vm4, %v1413_v8, 0.0 }
 0x22c   : > { %767 = vadd.xlane.f32.xlu0 %v766_v9 }
 0x29f   : > { %v768_v13 = vpop.xlane.xlu0 %767 }
 0x2a0   : > { %1414 = vrcp.f32 %v768_v13 }
 0x2a6   : > { %v1415_v16 = vpop.eup %1414 }
 0x2a7   : > { %v770_v17 = vmul.f32 %v1415_v16, %v1413_v8 }
 0x2a9   : > { %1314 = vmatmul.msk.f32.vlgmr.msra.gmra.mxu0 %vm759_vm4, %v770_v17 }
 0x2aa   : > { %955 = vmatpush.msra.mxu0 %v898_v18 }
 0x2b1   : > { %1346 = vmatmul.msk.f32.vlgmr.msrb.gmra.mxu0 %vm732_vm3, %v830_v21 }
 0x2b2   : > { %1074 = vmatpush.msrb.mxu0 %v1058_v47 }
 0x2b4   : > { %1075 = vmatpush.msrb.mxu0 %v1057_v55 }
 0x2b6   : > { %1076 = vmatpush.msrb.mxu0 %v1056_v56 }
 0x326   : > { %v791_v23 = vpop.f32.mrf.mxu0 }
 0x327   : > { %1353 = vmatmul.msk.f32.vlgmr.msra.gmra.mxu2 %vm732_vm3, %v791_v23 }
 0x32e   : > { %v923_v24 = vpop.f32.mrf.mxu0 }
 0x32f   : > { %v926_v25 = vsel %vm759_vm4, %v923_v24, -inf }
 0x330   : > { %927 = vmax.xlane.f32.xlu1 %v926_v25 }
 0x3a3   : > { %v928_v26 = vpop.xlane.xlu1 %927 }
 0x3a4   : > { %v929_v27 = vsub.f32 %v923_v24, %v928_v26 }
 0x3a6   : > { %v930_v28 = vmul.f32 1.442695, %v929_v27 }
 0x3a8   : > { %1416 = vpow2.f32 %v930_v28 }
 0x3aa   : > { %v1008_v48 = vpop.f32.mrf.mxu2 }
 0x3ae   : > { %v1417_v29 = vpop.eup %1416 }
 0x3af   : > { %v932_v30 = vsel %vm759_vm4, %v1417_v29, 0.0 }
 0x3b0   : > { %933 = vadd.xlane.f32.xlu1 %v932_v30 }
 0x423   : > { %v934_v34 = vpop.xlane.xlu1 %933 }
 0x424   : > { %1418 = vrcp.f32 %v934_v34 }
 0x42a   : > { %v1419_v35 = vpop.eup %1418 }
 0x42b   : > { %v936_v36 = vmul.f32 %v1419_v35, %v1417_v29 }
 0x42d   : > { %1347 = vmatmul.msk.f32.vlgmr.msra.gmra.mxu0 %vm759_vm4, %v936_v36 }
 0x4aa   : > { %v957_v42 = vpop.f32.mrf.mxu0 }
 0x4ab   : > { %1352 = vmatmul.msk.f32.vlgmr.msra.gmra.mxu1 %vm732_vm3, %v957_v42 }
 0x4b3   : > { %1356 = vmatmul.msk.f32.vlgmr.msrb.gmra.mxu1 %vm1082_vm5, %v591_v59 }
 0x528   : > { %v985_v49 = vpop.f32.mrf.mxu1 }
 0x529   : > { %v1009_v50 = vadd.f32 %v1008_v48, %v985_v49 }
 0x52b   : > { %v1011_v52 = vadd.f32 %v1009_v50, %v1786_v54  ;;  %v1055_v54 = vld [vmem:[%s1978_s12] sm:$0xff] }
 0x52c   : > { %1077 = vmatpush.msrb.mxu0 %v1055_v54 }
 0x52d   : > { %v1016_v53 = vadd.f32 %v1408_v51, %v1011_v52 }
 0x52f   : > { %1354 = vmatmul.msk.f32.vlgmr.msra.gmra.mxu3 %vm640_vm2, %v1016_v53 }
 0x530   : > { %v1103_v4 = vpop.f32.mrf.mxu1 }
 0x5b2   : > { %v1049_v61 = vpop.f32.mrf.mxu3 }
 0x5b3   : > { %v1050_v62 = vadd.f32 %v1409_v60, %v1049_v61 }
 0x5b5   : > { %v1052_v63 = vmax.f32 %v1050_v62, 0.0 }
 0x5b7   : > { %1355 = vmatmul.msk.f32.vlgmr.msrb.gmra.mxu0 %vm732_vm3, %v1052_v63 }
 0x634   : > { %v1079_v6 = vpop.f32.mrf.mxu0 }
 0x635   : > { %v1104_v7 = vadd.f32 %v1103_v4, %v1079_v6 }
 0x637   : > { %v1110_v8 = vadd.f32 %v1410_v5, %v1104_v7 }
 0x639   : > { %vm1111_vm6 = vcmp.ge.f32.partialorder %v1110_v8, 0.0  ;;  %v1112_v9 = vmul.f32 0.15, %v1110_v8 }
 0x63b   : > { %v1113_v10 = vsel %vm1111_vm6, %v1110_v8, %v1112_v9 }
 0x63c   : > { %1357 = vmatmul.msk.f32.vlgmr.msrb.gmra.mxu2 %vm732_vm3, %v1113_v10  ;;  %1149 = vst.msk [vmem:[%s574_s1] sm:$0xff] %vm732_vm3, %v1113_v10 }
 0x63d   : > { %1447 = shalt.err (!%p1444_p3)
}
 0x63e   : > { %1362 = dma.vmem_to_hbm [thread:$0]  (%p1615_p5), %s1171_s22, 128, %s1173_s3, %s1155_s24   ;;  %v1411_v12 = vld [vmem:[#allocation2] ss:$0 sm:$0xff]  ;;  %vm1147_vm8 = vcmask 7168  }
 0x63f   : > { %s586_s26 = scalar_lea.vmem %s1968_s2, %s1657_s30  ;;  %s590_s6 = scalar_lea.vmem %s1982_s16, %s1657_s30 }
 0x640   : > { %v593_v11 = vld [vmem:[%s586_s26] sm:$0xff] }
 0x641   : > { %vm1145_vm7 = vcmp.eq.f32.partialorder %v593_v11, 0.0 }
 0x6bf   : > { %v1142_v13 = vpop.f32.mrf.mxu2 }
 0x6c0   : > { %v1143_v14 = vadd.f32 %v1411_v12, %v1142_v13 }
 0x6c2   : > { %v1146_v15 = vsel %vm1145_vm7, -1e+09, %v1143_v14 }
 0x6c3   : > { %1148 = vst.msk [vmem:[%s590_s6] sm:$0xff] %vm1147_vm8, %v1146_v15 }
 0x6c4 PF: > { %s2008_s20 = sld [smem:[#allocation6_spill]]  ;;  %p1368_p4 = scmp.ge.s32.totalorder %s1482_s29, 2 }
 0x6c6   : > { %p1365_p5 = pnand %p1368_p4, %p1619_p6 }
 0x6c8   : > { %p1366_p7 = pneg %p1365_p5 }
 0x6ca   : > { %s1191_s19 = sand.u32 1, %s2008_s20  }
 0x6cb   : > { %s1192_s23 = scalar_lea.sflag [#allocation4], %s1191_s19 }
 0x6cc   : > { %1465 = dma.done.wait (%p1366_p7), %s1192_s23, 128  }
 0x6cd   : > { %1467 = vsyncadd (%p1366_p7), %s1192_s23, 4294967168  ;;  %s2010_s29 = sld [smem:[#allocation8_spill]]  ;;  %s2013_s26 = smov %s1474_s27 }
 0x6ce   : > { %s2011_s22 = sld [smem:[#allocation7_spill]] }
 0x6cf   : > { %s2012_s28 = sld [smem:[#allocation9_spill]] }
 0x6d3   : > { %p30_p8 = scmp.ge.s32.totalorder %s2010_s29, 4  }
 0x6d4   : > { %s2014_s27 = smov %s2011_s22 }
 0x6d5   :  { %32 = sbr.rel (!%p30_p8) target bundleno = 10 (0xa), region = 148 }
 0x6da   :  { %1198 = vsyncpa [#allocation4], 1 }
 0x6db   :  { %1200 = vsyncpa [#allocation4 + $0x1], 1 }

</bundles_post_ra>
